<compile_context>
chip_gen: v5e
topology: v5e:2x2
jax: 0.10.0
libtpu: 0.0.40
codegen_flags: <defaults>
</compile_context>

<pallas_src>
import jax
import jax.numpy as jnp
from jax import lax
from jax.experimental import pallas as pl
from jax.experimental.pallas import tpu as pltpu

B, S, E, V = 2, 8, 32, 128          # batch, seq, embedding_dim, vocab_size
LN_EPS = 1e-5                       # PyTorch nn.LayerNorm default eps
MERGE_EPS = 1e-8                    # eps used in SequenceMergingSeq
LANES = 128                         # slab lane width (one vreg lane group)


def attention_stream_forward(tokens, p):
    Bn, Sn = tokens.shape
    Vn, En = p["emb"].shape
    assert Vn <= LANES and 2 * En <= LANES and p["fc_w"].shape == (En, Vn)
    f32 = jnp.float32

    BP = max(8, -(-Bn // 8) * 8)                    # batch padded to a sublane group

    # Doubling shifts for the suffix-product scan.  Time is padded so each doubling
    # step is an elementwise multiply of two tile-aligned *shrinking* views — no
    # concatenate / fill needed in-kernel (padded groups get decay == 1).
    shifts = []
    k = 1
    while k < Sn:
        shifts.append(k)
        k *= 2
    G = Sn + sum(shifts) + 1                        # padded number of time groups

    # ---------------- token ids: pad batch->BP, time->G, go time-major ----------------
    tok_pad = jnp.zeros((BP, G), jnp.int32).at[:Bn, :Sn].set(tokens.astype(jnp.int32))
    tok_tm = tok_pad.T.reshape(G * BP, 1)           # (G*BP, 1), rows = t*BP + b

    # ---------------- trace-time weight folds (exact algebra) -------------------------
    dcol = (p["emb"] @ p["dw"] + p["db"][0, 0]).astype(f32)          # (V,1) decay logits
    emb_ext = jnp.concatenate([p["emb"].astype(f32), dcol], axis=1)  # (V, E+1)

    wrv_w = jnp.concatenate([p["wr_w"], p["wv_w"]], axis=1)          # (E, 2E) gate|value
    wrv_b = jnp.concatenate([p["wr_b"], p["wv_b"]], axis=1)          # (1, 2E)
    wrv_w_f = wrv_w * p["g1"].reshape(En, 1)                         # LN1 gain folded in
    wrv_b_f = p["b1"] @ wrv_w + wrv_b                                # LN1 bias folded in
    fc_b_f = p["b2"] @ p["fc_w"] + p["fc_b"]                         # LN2 bias folded in

    def pad_lanes(a):                                                # pad last dim to LANES
        a = a.astype(f32)
        return jnp.pad(a, ((0, 0), (0, LANES - a.shape[1])))

    def pad_block(a):                                                # bias row -> (8, LANES)
        a = pad_lanes(a)
        return jnp.pad(a, ((0, 8 - a.shape[0]), (0, 0)))

    # One packed parameter slab -> a single HBM->VMEM DMA.
    slab = jnp.concatenate([
        pad_lanes(emb_ext),      # rows [0, V)        gather table (emb | decay logit)
        pad_lanes(wrv_w_f),      # rows [V, V+E)      coupling weight, cols [0, 2E)
        pad_lanes(p["fc_w"]),    # rows [V+E, V+2E)   fc weight, cols [0, V)
        pad_block(wrv_b_f),      # row  V+2E          coupling bias (LN1-folded)
        pad_block(p["g2"]),      # row  V+2E+8        LN2 gain
        pad_block(fc_b_f),       # row  V+2E+16       fc bias (LN2-folded)
    ], axis=0)

    OFF_WRVW = Vn
    OFF_FCW = Vn + En
    OFF_WRVB = Vn + 2 * En
    OFF_G2 = OFF_WRVB + 8
    OFF_FCB = OFF_WRVB + 16

    def kernel(tok_ref, slab_ref, out_ref):
        # ---- embedding + decay-logit gather: one one-hot MXU matmul over the slab ----
        tok = tok_ref[...]                                               # (G*BP, 1) i32
        onehot = (tok == lax.broadcasted_iota(jnp.int32, (G * BP, Vn), 1)
                  ).astype(jnp.float32)
        gathered = jnp.dot(onehot, slab_ref[0:Vn, :],
                           preferred_element_type=jnp.float32)           # (G*BP, LANES)

        x = gathered[0:Sn * BP, 0:En]                                    # real timesteps
        row = lax.broadcasted_iota(jnp.int32, (G * BP, 1), 0)
        dec = jnp.where(row < Sn * BP,
                        jax.nn.sigmoid(gathered[:, En:En + 1]),
                        1.0)                                             # padded groups -> 1

        # ---- per-step terms (fully vectorized, no serial dependence) ----
        ex = jnp.exp(x)                                                  # (S*BP, E)
        exv = ex * x                                                     # exp(C_t) * V_t
        exsum = jnp.sum(ex, axis=-1, keepdims=True)                      # (S*BP, 1)

        # ---- suffix decay products D_t = prod_{u>t} d_u (log2(S) doubling steps) ----
        q = dec[BP:, :]                                                  # e_t = d_{t+1}
        for sh in shifts:
            r = sh * BP
            q = q[: q.shape[0] - r, :] * q[r:, :]
        d_suffix = q                                                     # (S*BP, 1)

        # ---- closed-form last-step state: a = sum_t D_t*exsum_t, b = sum_t D_t*exv_t --
        def time_tree_sum(z):                                            # (S*BP,X)->(BP,X)
            parts = [z[i * BP:(i + 1) * BP, :] for i in range(Sn)]
            while len(parts) > 1:
                nxt = [parts[i] + parts[i + 1] for i in range(0, len(parts) - 1, 2)]
                if len(parts) % 2:
                    nxt.append(parts[-1])
                parts = nxt
            return parts[0]

        a_fin = time_tree_sum(d_suffix * exsum)                          # (BP, 1)
        b_fin = time_tree_sum(d_suffix * exv)                            # (BP, E)
        merged = b_fin / (a_fin + MERGE_EPS)                             # last step only

        # ---- LayerNorm 1 (affine folded into the coupling weights) ----
        mu1 = jnp.mean(merged, axis=-1, keepdims=True)
        var1 = jnp.mean((merged - mu1) ** 2, axis=-1, keepdims=True)
        n1 = (merged - mu1) * lax.rsqrt(var1 + LN_EPS)

        # ---- StateCoupling: fused gate|value matmul (one MXU push) ----
        gv2 = jnp.dot(n1, slab_ref[OFF_WRVW:OFF_WRVW + En, :],
                      preferred_element_type=jnp.float32)
        gv2 = gv2 + slab_ref[OFF_WRVB:OFF_WRVB + 1, :]
        gate = jax.nn.sigmoid(gv2[:, 0:En])
        value = gv2[:, En:2 * En]
        gv = gate * value

        # ---- LayerNorm 2 (bias folded into fc bias) + residual + final fc ----
        mu2 = jnp.mean(gv, axis=-1, keepdims=True)
        var2 = jnp.mean((gv - mu2) ** 2, axis=-1, keepdims=True)
        n2 = (gv - mu2) * lax.rsqrt(var2 + LN_EPS) * slab_ref[OFF_G2:OFF_G2 + 1, 0:En]

        x_last = gathered[(Sn - 1) * BP:Sn * BP, 0:En]                   # x[:, -1, :]
        y = x_last + n2

        logits = jnp.dot(y, slab_ref[OFF_FCW:OFF_FCW + En, :],
                         preferred_element_type=jnp.float32)
        logits = logits + slab_ref[OFF_FCB:OFF_FCB + 1, :]
        out_ref[...] = logits[0:Bn, 0:Vn]

    vmem = pl.BlockSpec(memory_space=pltpu.MemorySpace.VMEM)
    return pl.pallas_call(
        kernel,
        out_shape=jax.ShapeDtypeStruct((Bn, Vn), f32),
        in_specs=[vmem, vmem],
        out_specs=vmem,
    )(tok_tm, slab)


def init_params(key, vocab, emb):
    ks = jax.random.split(key, 9)

    def w(k, shape, scale=0.1):
        return (scale * jax.random.normal(k, shape)).astype(jnp.float32)

    # Linear weights stored as (in_features, out_features): y = x @ W + b
    return dict(
        emb=w(ks[0], (vocab, emb)),
        dw=w(ks[1], (emb, 1)),          # decay_net weight
        db=w(ks[2], (1, 1)),            # decay_net bias
        g1=jnp.ones((1, emb), jnp.float32),
        b1=jnp.zeros((1, emb), jnp.float32),
        wr_w=w(ks[3], (emb, emb)),
        wr_b=w(ks[4], (1, emb)),
        wv_w=w(ks[5], (emb, emb)),
        wv_b=w(ks[6], (1, emb)),
        g2=jnp.ones((1, emb), jnp.float32),
        b2=jnp.zeros((1, emb), jnp.float32),
        fc_w=w(ks[7], (emb, vocab)),
        fc_b=w(ks[8], (1, vocab)),
    )


def reference_forward(x, p):
    """Pure-JAX reference mirroring the PyTorch module (for validation)."""
    Bn, Sn, En = x.shape
    dec = jax.nn.sigmoid(x @ p["dw"] + p["db"][0, 0])      # (B, S, 1)
    ex = jnp.exp(x)
    a = jnp.zeros((Bn, 1), jnp.float32)
    b = jnp.zeros((Bn, En), jnp.float32)
    outs = []
    for t in range(Sn):
        d = dec[:, t, :]
        a = d * a + ex[:, t, :].sum(-1, keepdims=True)
        b = d * b + ex[:, t, :] * x[:, t, :]
        outs.append(b / (a + MERGE_EPS))
    merged = jnp.stack(outs, axis=1)

    def ln(z, g, bb):
        m = z.mean(-1, keepdims=True)
        v = ((z - m) ** 2).mean(-1, keepdims=True)
        return (z - m) / jnp.sqrt(v + LN_EPS) * g + bb

    merged = ln(merged, p["g1"].reshape(1, 1, En), p["b1"].reshape(1, 1, En))
    gate = jax.nn.sigmoid(merged @ p["wr_w"] + p["wr_b"])
    value = merged @ p["wv_w"] + p["wv_b"]
    coupled = ln(gate * value, p["g2"].reshape(1, 1, En), p["b2"].reshape(1, 1, En))
    y = x + coupled
    return y[:, -1, :] @ p["fc_w"] + p["fc_b"]


if __name__ == "__main__":
    key = jax.random.PRNGKey(0)
    kp, kt = jax.random.split(key)
    params = init_params(kp, V, E)

    tokens = jax.random.randint(kt, (B, S), 0, V).astype(jnp.int32)   # (B, S) token ids

    fwd = jax.jit(attention_stream_forward)
    out = jax.block_until_ready(fwd(tokens, params))

    x_emb = params["emb"][tokens]                         # embedding lookup for the reference
    ref = reference_forward(x_emb, params)

    assert out.shape == (B, V)
    assert bool(jnp.all(jnp.isfinite(out)))
    assert jnp.allclose(out, ref, rtol=1e-2, atol=1e-2)
    print("KERNEL_OK")
</pallas_src>

<mosaic_0001>
module attributes {stable_mosaic.version = 11 : i64} {
  func.func @kernel(%arg0: memref<128x1xi32, #tpu.memory_space<vmem>>, %arg1: memref<216x128xf32, #tpu.memory_space<vmem>>, %arg2: memref<2x128xf32, #tpu.memory_space<vmem>>) attributes {dimension_semantics = [], scalar_prefetch = 0 : i64, scratch_operands = 0 : i64, tpu.core_type = #tpu.core_type<tc>} {
    %c0 = arith.constant 0 : index
    %c0_0 = arith.constant 0 : index
    %0 = vector.load %arg0[%c0, %c0_0] : memref<128x1xi32, #tpu.memory_space<vmem>>, vector<128x1xi32>
    %1 = tpu.iota {dimensions = array<i32: 1>} : vector<128x128xi32>
    %2 = vector.broadcast %0 : vector<128x1xi32> to vector<128x128xi32>
    %3 = arith.cmpi eq, %2, %1 : vector<128x128xi32>
    %4 = arith.extui %3 : vector<128x128xi1> to vector<128x128xi32>
    %5 = arith.sitofp %4 : vector<128x128xi32> to vector<128x128xf32>
    %c0_1 = arith.constant 0 : index
    %c0_2 = arith.constant 0 : index
    %6 = vector.load %arg1[%c0_1, %c0_2] : memref<216x128xf32, #tpu.memory_space<vmem>>, vector<128x128xf32>
    %cst = arith.constant dense<0.000000e+00> : vector<128x128xf32>
    %7 = tpu.matmul %5, %6, %cst {dimension_numbers = #tpu.dot_dimension_numbers<[1], [0], [0], [1], [0, 0, 1, 1], [], []>} : vector<128x128xf32>, vector<128x128xf32>, vector<128x128xf32> -> vector<128x128xf32>
    %8 = vector.extract_strided_slice %7 {offsets = [0, 0], sizes = [64, 32], strides = [1, 1]} : vector<128x128xf32> to vector<64x32xf32>
    %9 = tpu.iota {dimensions = array<i32: 0>} : vector<128x1xi32>
    %c64_i32 = arith.constant 64 : i32
    %10 = vector.broadcast %c64_i32 : i32 to vector<128x1xi32>
    %11 = arith.cmpi slt, %9, %10 : vector<128x1xi32>
    %12 = vector.extract_strided_slice %7 {offsets = [0, 32], sizes = [128, 1], strides = [1, 1]} : vector<128x128xf32> to vector<128x1xf32>
    %13 = arith.negf %12 : vector<128x1xf32>
    %14 = math.exp %13 : vector<128x1xf32>
    %cst_3 = arith.constant 1.000000e+00 : f32
    %15 = vector.broadcast %cst_3 : f32 to vector<128x1xf32>
    %16 = arith.addf %15, %14 : vector<128x1xf32>
    %17 = arith.divf %15, %16 : vector<128x1xf32>
    %cst_4 = arith.constant 1.000000e+00 : f32
    %18 = vector.broadcast %cst_4 : f32 to vector<128x1xf32>
    %19 = arith.select %11, %17, %18 : vector<128x1xi1>, vector<128x1xf32>
    %20 = math.exp %8 : vector<64x32xf32>
    %21 = arith.mulf %20, %8 : vector<64x32xf32>
    %cst_5 = arith.constant dense<0.000000e+00> : vector<64xf32>
    %22 = vector.multi_reduction <add>, %20, %cst_5 [1] : vector<64x32xf32> to vector<64xf32>
    %23 = vector.shape_cast %22 : vector<64xf32> to vector<64x1xf32>
    %24 = vector.extract_strided_slice %19 {offsets = [8, 0], sizes = [120, 1], strides = [1, 1]} : vector<128x1xf32> to vector<120x1xf32>
    %25 = vector.extract_strided_slice %24 {offsets = [0, 0], sizes = [112, 1], strides = [1, 1]} : vector<120x1xf32> to vector<112x1xf32>
    %26 = vector.extract_strided_slice %24 {offsets = [8, 0], sizes = [112, 1], strides = [1, 1]} : vector<120x1xf32> to vector<112x1xf32>
    %27 = arith.mulf %25, %26 : vector<112x1xf32>
    %28 = vector.extract_strided_slice %27 {offsets = [0, 0], sizes = [96, 1], strides = [1, 1]} : vector<112x1xf32> to vector<96x1xf32>
    %29 = vector.extract_strided_slice %27 {offsets = [16, 0], sizes = [96, 1], strides = [1, 1]} : vector<112x1xf32> to vector<96x1xf32>
    %30 = arith.mulf %28, %29 : vector<96x1xf32>
    %31 = vector.extract_strided_slice %30 {offsets = [0, 0], sizes = [64, 1], strides = [1, 1]} : vector<96x1xf32> to vector<64x1xf32>
    %32 = vector.extract_strided_slice %30 {offsets = [32, 0], sizes = [64, 1], strides = [1, 1]} : vector<96x1xf32> to vector<64x1xf32>
    %33 = arith.mulf %31, %32 : vector<64x1xf32>
    %34 = arith.mulf %33, %23 : vector<64x1xf32>
    %35 = vector.extract_strided_slice %34 {offsets = [0, 0], sizes = [8, 1], strides = [1, 1]} : vector<64x1xf32> to vector<8x1xf32>
    %36 = vector.extract_strided_slice %34 {offsets = [8, 0], sizes = [8, 1], strides = [1, 1]} : vector<64x1xf32> to vector<8x1xf32>
    %37 = vector.extract_strided_slice %34 {offsets = [16, 0], sizes = [8, 1], strides = [1, 1]} : vector<64x1xf32> to vector<8x1xf32>
    %38 = vector.extract_strided_slice %34 {offsets = [24, 0], sizes = [8, 1], strides = [1, 1]} : vector<64x1xf32> to vector<8x1xf32>
    %39 = vector.extract_strided_slice %34 {offsets = [32, 0], sizes = [8, 1], strides = [1, 1]} : vector<64x1xf32> to vector<8x1xf32>
    %40 = vector.extract_strided_slice %34 {offsets = [40, 0], sizes = [8, 1], strides = [1, 1]} : vector<64x1xf32> to vector<8x1xf32>
    %41 = vector.extract_strided_slice %34 {offsets = [48, 0], sizes = [8, 1], strides = [1, 1]} : vector<64x1xf32> to vector<8x1xf32>
    %42 = vector.extract_strided_slice %34 {offsets = [56, 0], sizes = [8, 1], strides = [1, 1]} : vector<64x1xf32> to vector<8x1xf32>
    %43 = arith.addf %35, %36 : vector<8x1xf32>
    %44 = arith.addf %37, %38 : vector<8x1xf32>
    %45 = arith.addf %39, %40 : vector<8x1xf32>
    %46 = arith.addf %41, %42 : vector<8x1xf32>
    %47 = arith.addf %43, %44 : vector<8x1xf32>
    %48 = arith.addf %45, %46 : vector<8x1xf32>
    %49 = arith.addf %47, %48 : vector<8x1xf32>
    %50 = vector.broadcast %33 : vector<64x1xf32> to vector<64x32xf32>
    %51 = arith.mulf %50, %21 : vector<64x32xf32>
    %52 = vector.extract_strided_slice %51 {offsets = [0, 0], sizes = [8, 32], strides = [1, 1]} : vector<64x32xf32> to vector<8x32xf32>
    %53 = vector.extract_strided_slice %51 {offsets = [8, 0], sizes = [8, 32], strides = [1, 1]} : vector<64x32xf32> to vector<8x32xf32>
    %54 = vector.extract_strided_slice %51 {offsets = [16, 0], sizes = [8, 32], strides = [1, 1]} : vector<64x32xf32> to vector<8x32xf32>
    %55 = vector.extract_strided_slice %51 {offsets = [24, 0], sizes = [8, 32], strides = [1, 1]} : vector<64x32xf32> to vector<8x32xf32>
    %56 = vector.extract_strided_slice %51 {offsets = [32, 0], sizes = [8, 32], strides = [1, 1]} : vector<64x32xf32> to vector<8x32xf32>
    %57 = vector.extract_strided_slice %51 {offsets = [40, 0], sizes = [8, 32], strides = [1, 1]} : vector<64x32xf32> to vector<8x32xf32>
    %58 = vector.extract_strided_slice %51 {offsets = [48, 0], sizes = [8, 32], strides = [1, 1]} : vector<64x32xf32> to vector<8x32xf32>
    %59 = vector.extract_strided_slice %51 {offsets = [56, 0], sizes = [8, 32], strides = [1, 1]} : vector<64x32xf32> to vector<8x32xf32>
    %60 = arith.addf %52, %53 : vector<8x32xf32>
    %61 = arith.addf %54, %55 : vector<8x32xf32>
    %62 = arith.addf %56, %57 : vector<8x32xf32>
    %63 = arith.addf %58, %59 : vector<8x32xf32>
    %64 = arith.addf %60, %61 : vector<8x32xf32>
    %65 = arith.addf %62, %63 : vector<8x32xf32>
    %66 = arith.addf %64, %65 : vector<8x32xf32>
    %cst_6 = arith.constant 9.99999993E-9 : f32
    %67 = vector.broadcast %cst_6 : f32 to vector<8x1xf32>
    %68 = arith.addf %49, %67 : vector<8x1xf32>
    %69 = vector.broadcast %68 : vector<8x1xf32> to vector<8x32xf32>
    %70 = arith.divf %66, %69 : vector<8x32xf32>
    %cst_7 = arith.constant dense<0.000000e+00> : vector<8xf32>
    %71 = vector.multi_reduction <add>, %70, %cst_7 [1] : vector<8x32xf32> to vector<8xf32>
    %72 = vector.shape_cast %71 : vector<8xf32> to vector<8x1xf32>
    %cst_8 = arith.constant 3.200000e+01 : f32
    %73 = vector.broadcast %cst_8 : f32 to vector<8x1xf32>
    %74 = arith.divf %72, %73 : vector<8x1xf32>
    %75 = vector.broadcast %74 : vector<8x1xf32> to vector<8x32xf32>
    %76 = arith.subf %70, %75 : vector<8x32xf32>
    %77 = arith.mulf %76, %76 : vector<8x32xf32>
    %cst_9 = arith.constant dense<0.000000e+00> : vector<8xf32>
    %78 = vector.multi_reduction <add>, %77, %cst_9 [1] : vector<8x32xf32> to vector<8xf32>
    %79 = vector.shape_cast %78 : vector<8xf32> to vector<8x1xf32>
    %cst_10 = arith.constant 3.200000e+01 : f32
    %80 = vector.broadcast %cst_10 : f32 to vector<8x1xf32>
    %81 = arith.divf %79, %80 : vector<8x1xf32>
    %82 = vector.broadcast %74 : vector<8x1xf32> to vector<8x32xf32>
    %83 = arith.subf %70, %82 : vector<8x32xf32>
    %cst_11 = arith.constant 9.99999974E-6 : f32
    %84 = vector.broadcast %cst_11 : f32 to vector<8x1xf32>
    %85 = arith.addf %81, %84 : vector<8x1xf32>
    %86 = math.rsqrt %85 : vector<8x1xf32>
    %87 = vector.broadcast %86 : vector<8x1xf32> to vector<8x32xf32>
    %88 = arith.mulf %83, %87 : vector<8x32xf32>
    %c128 = arith.constant 128 : index
    %c0_12 = arith.constant 0 : index
    %89 = vector.load %arg1[%c128, %c0_12] : memref<216x128xf32, #tpu.memory_space<vmem>>, vector<32x128xf32>
    %cst_13 = arith.constant dense<0.000000e+00> : vector<8x128xf32>
    %90 = tpu.matmul %88, %89, %cst_13 {dimension_numbers = #tpu.dot_dimension_numbers<[1], [0], [0], [1], [0, 0, 1, 1], [], []>} : vector<8x32xf32>, vector<32x128xf32>, vector<8x128xf32> -> vector<8x128xf32>
    %c192 = arith.constant 192 : index
    %c0_14 = arith.constant 0 : index
    %91 = vector.load %arg1[%c192, %c0_14] : memref<216x128xf32, #tpu.memory_space<vmem>>, vector<1x128xf32>
    %92 = vector.broadcast %91 : vector<1x128xf32> to vector<8x128xf32>
    %93 = arith.addf %90, %92 : vector<8x128xf32>
    %94 = vector.extract_strided_slice %93 {offsets = [0, 0], sizes = [8, 32], strides = [1, 1]} : vector<8x128xf32> to vector<8x32xf32>
    %95 = arith.negf %94 : vector<8x32xf32>
    %96 = math.exp %95 : vector<8x32xf32>
    %cst_15 = arith.constant 1.000000e+00 : f32
    %97 = vector.broadcast %cst_15 : f32 to vector<8x32xf32>
    %98 = arith.addf %97, %96 : vector<8x32xf32>
    %99 = arith.divf %97, %98 : vector<8x32xf32>
    %100 = vector.extract_strided_slice %93 {offsets = [0, 32], sizes = [8, 32], strides = [1, 1]} : vector<8x128xf32> to vector<8x32xf32>
    %101 = arith.mulf %99, %100 : vector<8x32xf32>
    %cst_16 = arith.constant dense<0.000000e+00> : vector<8xf32>
    %102 = vector.multi_reduction <add>, %101, %cst_16 [1] : vector<8x32xf32> to vector<8xf32>
    %103 = vector.shape_cast %102 : vector<8xf32> to vector<8x1xf32>
    %cst_17 = arith.constant 3.200000e+01 : f32
    %104 = vector.broadcast %cst_17 : f32 to vector<8x1xf32>
    %105 = arith.divf %103, %104 : vector<8x1xf32>
    %106 = vector.broadcast %105 : vector<8x1xf32> to vector<8x32xf32>
    %107 = arith.subf %101, %106 : vector<8x32xf32>
    %108 = arith.mulf %107, %107 : vector<8x32xf32>
    %cst_18 = arith.constant dense<0.000000e+00> : vector<8xf32>
    %109 = vector.multi_reduction <add>, %108, %cst_18 [1] : vector<8x32xf32> to vector<8xf32>
    %110 = vector.shape_cast %109 : vector<8xf32> to vector<8x1xf32>
    %cst_19 = arith.constant 3.200000e+01 : f32
    %111 = vector.broadcast %cst_19 : f32 to vector<8x1xf32>
    %112 = arith.divf %110, %111 : vector<8x1xf32>
    %113 = vector.broadcast %105 : vector<8x1xf32> to vector<8x32xf32>
    %114 = arith.subf %101, %113 : vector<8x32xf32>
    %cst_20 = arith.constant 9.99999974E-6 : f32
    %115 = vector.broadcast %cst_20 : f32 to vector<8x1xf32>
    %116 = arith.addf %112, %115 : vector<8x1xf32>
    %117 = math.rsqrt %116 : vector<8x1xf32>
    %118 = vector.broadcast %117 : vector<8x1xf32> to vector<8x32xf32>
    %119 = arith.mulf %114, %118 : vector<8x32xf32>
    %c200 = arith.constant 200 : index
    %c0_21 = arith.constant 0 : index
    %120 = vector.load %arg1[%c200, %c0_21] : memref<216x128xf32, #tpu.memory_space<vmem>>, vector<1x32xf32>
    %121 = vector.broadcast %120 : vector<1x32xf32> to vector<8x32xf32>
    %122 = arith.mulf %119, %121 : vector<8x32xf32>
    %123 = vector.extract_strided_slice %7 {offsets = [56, 0], sizes = [8, 32], strides = [1, 1]} : vector<128x128xf32> to vector<8x32xf32>
    %124 = arith.addf %123, %122 : vector<8x32xf32>
    %c160 = arith.constant 160 : index
    %c0_22 = arith.constant 0 : index
    %125 = vector.load %arg1[%c160, %c0_22] : memref<216x128xf32, #tpu.memory_space<vmem>>, vector<32x128xf32>
    %cst_23 = arith.constant dense<0.000000e+00> : vector<8x128xf32>
    %126 = tpu.matmul %124, %125, %cst_23 {dimension_numbers = #tpu.dot_dimension_numbers<[1], [0], [0], [1], [0, 0, 1, 1], [], []>} : vector<8x32xf32>, vector<32x128xf32>, vector<8x128xf32> -> vector<8x128xf32>
    %c208 = arith.constant 208 : index
    %c0_24 = arith.constant 0 : index
    %127 = vector.load %arg1[%c208, %c0_24] : memref<216x128xf32, #tpu.memory_space<vmem>>, vector<1x128xf32>
    %128 = vector.broadcast %127 : vector<1x128xf32> to vector<8x128xf32>
    %129 = arith.addf %126, %128 : vector<8x128xf32>
    %130 = vector.extract_strided_slice %129 {offsets = [0, 0], sizes = [2, 128], strides = [1, 1]} : vector<8x128xf32> to vector<2x128xf32>
    %c0_25 = arith.constant 0 : index
    %c0_26 = arith.constant 0 : index
    %131 = vector.load %arg2[%c0_25, %c0_26] : memref<2x128xf32, #tpu.memory_space<vmem>>, vector<2x128xf32>
    tpu.vector_store %arg2[%c0_25, %c0_26], %130 {strides = array<i32>} : memref<2x128xf32, #tpu.memory_space<vmem>>, vector<2x128xf32>,
    return
  }
}

</mosaic_0001>

<bundles_post_ra>
// kernel: attention_stream_forward.1
= control target key start
LH: loop header
LB: loop body
LE: loop exit
PB: predicated region body
PF: predicated region fallthrough
CT: control target
= control target key end

     0   :  { %v1066_v2 = vmov 0   ;;  %s1482_s0 = inlined_call_operand.vmem [shape: s32[128,1], index: 0, kind: input, shape index: {}]   ;;  %s1483_s1 = inlined_call_operand.vmem [shape: f32[216,128], index: 1, kind: input, shape index: {}]   ;;  %s1484_s2 = inlined_call_operand.hbm [shape: f32[2,128], index: 2, kind: output, shape index: {}]  }
   0x1   :  { %v13_v0 = vld [vmem:[%s1482_s0 + $0x8] sm:$0xff]  ;;  %v12_v1 = vld [vmem:[%s1482_s0] sm:$0xff]  ;;  %972 = vset.pattern.permute.xlu1 %v1066_v2  ;;  %971 = vset.pattern.permute.xlu0 %v1066_v2  ;;  %v14_v3 = vld [vmem:[%s1482_s0 + $0x10] sm:$0xff] }
   0x2   :  { %34 = vperm.xlu1 %972, %v13_v0   ;;  %31 = vperm.xlu0 %971, %v12_v1   ;;  %v141_v4 = vld [vmem:[%s1483_s1 + $0x78] sm:$0xff]  ;;  %v140_v5 = vld [vmem:[%s1483_s1 + $0x70] sm:$0xff]  ;;  %v139_v6 = vld [vmem:[%s1483_s1 + $0x68] sm:$0xff] }
   0x3   :  { %973 = vset.pattern.permute.xlu2 %v1066_v2  ;;  %142 = vmatpush.msra.mxu0 %v141_v4  ;;  %v17_v7 = vld [vmem:[%s1482_s0 + $0x28] sm:$0xff]  ;;  %v138_v8 = vld [vmem:[%s1483_s1 + $0x60] sm:$0xff]  ;;  %v137_v10 = vld [vmem:[%s1483_s1 + $0x58] sm:$0xff] }
   0x4   :  { %37 = vperm.xlu2 %973, %v14_v3   ;;  %917 = vmatpush.msra.mxu1 %v141_v4  ;;  %v16_v9 = vld [vmem:[%s1482_s0 + $0x20] sm:$0xff] }
   0x5   :  { %143 = vmatpush.msra.mxu0 %v140_v5  ;;  %919 = vmatpush.msra.mxu3 %v141_v4 }
   0x6   :  { %920 = vmatpush.msra.mxu1 %v140_v5  ;;  %918 = vmatpush.msra.mxu2 %v141_v4 }
   0x7   :  { %144 = vmatpush.msra.mxu0 %v139_v6  ;;  %922 = vmatpush.msra.mxu3 %v140_v5 }
   0x8   :  { %923 = vmatpush.msra.mxu1 %v139_v6  ;;  %921 = vmatpush.msra.mxu2 %v140_v5 }
   0x9   :  { %7 = vsyncpa [#allocation3], 0  ;;  %v18_v11 = vld [vmem:[%s1482_s0 + $0x30] sm:$0xff]  ;;  %145 = vmatpush.msra.mxu0 %v138_v8  ;;  %925 = vmatpush.msra.mxu3 %v139_v6  ;;  %v135_v13 = vld [vmem:[%s1483_s1 + $0x48] sm:$0xff]  ;;  %v28_v25 = vlaneseq  ;;  %v1067_v28 = vmov 1.0   ;;  %vm563_vm8 = vcmask 261120  }
   0xa   :  { %46 = vperm.xlu1 %972, %v17_v7   ;;  %43 = vperm.xlu0 %971, %v16_v9   ;;  %v136_v12 = vld [vmem:[%s1483_s1 + $0x50] sm:$0xff]  ;;  %v134_v14 = vld [vmem:[%s1483_s1 + $0x40] sm:$0xff]  ;;  %v19_v15 = vld [vmem:[%s1482_s0 + $0x38] sm:$0xff]  ;;  %v1068_v1 = vmov 32   ;;  %s1070_s11 = smov 96   ;;  %s858_s15 = sshll.u32 %s1484_s2, 4  ;;  %s859_s15 = int_to_ptr.hbm [resolvable:$true] %s858_s15 }
   0xb   :  { %146 = vmatpush.msra.mxu0 %v137_v10  ;;  %926 = vmatpush.msra.mxu1 %v138_v8  ;;  %v15_v16 = vld [vmem:[%s1482_s0 + $0x18] sm:$0xff]  ;;  %v132_v18 = vld [vmem:[%s1483_s1 + $0x30] sm:$0xff]  ;;  %v131_v19 = vld [vmem:[%s1483_s1 + $0x28] sm:$0xff]  ;;  %v1162_v26 = vand.u32 127, %v28_v25 }
   0xc   :  { %49 = vperm.xlu2 %973, %v18_v11   ;;  %928 = vmatpush.msra.mxu3 %v138_v8  ;;  %v133_v17 = vld [vmem:[%s1483_s1 + $0x38] sm:$0xff]  ;;  %v130_v20 = vld [vmem:[%s1483_s1 + $0x20] sm:$0xff]  ;;  %v128_v22 = vld [vmem:[%s1483_s1 + $0x10] sm:$0xff] }
   0xd   :  { %147 = vmatpush.msra.mxu0 %v136_v12  ;;  %929 = vmatpush.msra.mxu1 %v137_v10  ;;  %v129_v21 = vld [vmem:[%s1483_s1 + $0x18] sm:$0xff]  ;;  %v127_v23 = vld [vmem:[%s1483_s1 + $0x8] sm:$0xff]  ;;  %v126_v24 = vld [vmem:[%s1483_s1] sm:$0xff] }
   0xe   :  { %931 = vmatpush.msra.mxu3 %v137_v10  ;;  %924 = vmatpush.msra.mxu2 %v139_v6 }
   0xf   :  { %148 = vmatpush.msra.mxu0 %v135_v13  ;;  %932 = vmatpush.msra.mxu1 %v136_v12 }
  0x10   :  { %934 = vmatpush.msra.mxu3 %v136_v12  ;;  %927 = vmatpush.msra.mxu2 %v138_v8 }
  0x11   :  { %149 = vmatpush.msra.mxu0 %v134_v14  ;;  %935 = vmatpush.msra.mxu1 %v135_v13 }
  0x12   :  { %52 = vperm.xlu1 %972, %v19_v15   ;;  %40 = vperm.xlu0 %971, %v15_v16  }
  0x13   :  { %150 = vmatpush.msra.mxu0 %v133_v17  ;;  %938 = vmatpush.msra.mxu1 %v134_v14 }
  0x14   :  { %937 = vmatpush.msra.mxu3 %v135_v13  ;;  %930 = vmatpush.msra.mxu2 %v137_v10 }
  0x15   :  { %151 = vmatpush.msra.mxu0 %v132_v18  ;;  %941 = vmatpush.msra.mxu1 %v133_v17 }
  0x16   :  { %940 = vmatpush.msra.mxu3 %v134_v14  ;;  %933 = vmatpush.msra.mxu2 %v136_v12 }
  0x17   :  { %152 = vmatpush.msra.mxu0 %v131_v19  ;;  %944 = vmatpush.msra.mxu1 %v132_v18 }
  0x18   :  { %943 = vmatpush.msra.mxu3 %v133_v17  ;;  %936 = vmatpush.msra.mxu2 %v135_v13 }
  0x19   :  { %153 = vmatpush.msra.mxu0 %v130_v20  ;;  %947 = vmatpush.msra.mxu1 %v131_v19 }
  0x1a   :  { %946 = vmatpush.msra.mxu3 %v132_v18  ;;  %939 = vmatpush.msra.mxu2 %v134_v14 }
  0x1b   :  { %154 = vmatpush.msra.mxu0 %v129_v21  ;;  %950 = vmatpush.msra.mxu1 %v130_v20 }
  0x1c   :  { %949 = vmatpush.msra.mxu3 %v131_v19  ;;  %942 = vmatpush.msra.mxu2 %v133_v17 }
  0x1d   :  { %155 = vmatpush.msra.mxu0 %v128_v22  ;;  %953 = vmatpush.msra.mxu1 %v129_v21 }
  0x1e   :  { %952 = vmatpush.msra.mxu3 %v130_v20  ;;  %945 = vmatpush.msra.mxu2 %v132_v18 }
  0x1f   :  { %156 = vmatpush.msra.mxu0 %v127_v23  ;;  %956 = vmatpush.msra.mxu1 %v128_v22 }
  0x20   :  { %955 = vmatpush.msra.mxu3 %v129_v21  ;;  %948 = vmatpush.msra.mxu2 %v131_v19 }
  0x21   :  { %959 = vmatpush.msra.mxu1 %v127_v23  ;;  %157 = vmatpush.msra.mxu0 %v126_v24 }
  0x22   :  { %958 = vmatpush.msra.mxu3 %v128_v22  ;;  %951 = vmatpush.msra.mxu2 %v130_v20 }
  0x23   :  { %962 = vmatpush.msra.mxu1 %v126_v24  ;;  %975 = vset.pattern.permute.xlu1 %v1068_v1 }
  0x24   :  { %961 = vmatpush.msra.mxu3 %v127_v23  ;;  %954 = vmatpush.msra.mxu2 %v129_v21 }
  0x25   :  { %976 = vset.pattern.permute.xlu2 %v1068_v1  ;;  %974 = vset.pattern.permute.xlu0 %v1068_v1 }
  0x26   :  { %957 = vmatpush.msra.mxu2 %v128_v22  ;;  %964 = vmatpush.msra.mxu3 %v126_v24 }
  0x28   :  { %960 = vmatpush.msra.mxu2 %v127_v23 }
  0x2a   :  { %963 = vmatpush.msra.mxu2 %v126_v24 }
  0x5e   :  { %v38_v31 = vpop.permute.xlu2 %37 }
  0x5f   :  { %vm80_vm3 = vcmp.eq.s32.totalorder %v38_v31, %v1162_v26 }
  0x66   :  { %v50_v33 = vpop.permute.xlu2 %49 }
  0x67   :  { %vm84_vm5 = vcmp.eq.s32.totalorder %v50_v33, %v1162_v26 }
  0x74   :  { %v32_v27 = vpop.permute.xlu0 %31  ;;  %v35_v29 = vpop.permute.xlu1 %34 }
  0x75   :  { %vm78_vm0 = vcmp.eq.s32.totalorder %v32_v27, %v1162_v26  ;;  %vm79_vm1 = vcmp.eq.s32.totalorder %v35_v29, %v1162_v26 }
  0x76   :  { %883 = vmatmul.msk.f32.vlgmr.msra.gmra.mxu0 %vm78_vm0, %v1067_v28 }
  0x7c   :  { %v44_v30 = vpop.permute.xlu0 %43  ;;  %v47_v32 = vpop.permute.xlu1 %46 }
  0x7d   :  { %vm82_vm2 = vcmp.eq.s32.totalorder %v44_v30, %v1162_v26  ;;  %vm83_vm4 = vcmp.eq.s32.totalorder %v47_v32, %v1162_v26 }
  0x7e   :  { %884 = vmatmul.msk.f32.gmra.mxu0 %vm79_vm1, %v1067_v28  ;;  %887 = vmatmul.msk.f32.vlgmr.msra.gmra.mxu1 %vm82_vm2, %v1067_v28 }
  0x84   :  { %v41_v34 = vpop.permute.xlu0 %40  ;;  %v53_v35 = vpop.permute.xlu1 %52 }
  0x85   :  { %vm81_vm6 = vcmp.eq.s32.totalorder %v41_v34, %v1162_v26  ;;  %vm85_vm7 = vcmp.eq.s32.totalorder %v53_v35, %v1162_v26 }
  0x86   :  { %885 = vmatmul.msk.f32.gmra.mxu0 %vm80_vm3, %v1067_v28  ;;  %888 = vmatmul.msk.f32.gmra.mxu1 %vm83_vm4, %v1067_v28 }
  0x8e   :  { %886 = vmatmul.msk.f32.gmra.mxu0 %vm81_vm6, %v1067_v28  ;;  %889 = vmatmul.msk.f32.gmra.mxu1 %vm84_vm5, %v1067_v28 }
  0x96   :  { %890 = vmatmul.msk.f32.gmra.mxu1 %vm85_vm7, %v1067_v28 }
  0xf3   :  { %v159_v36 = vpop.f32.mrf.mxu0 }
  0xf4   :  { %v539_v37 = vmul.f32 1.442695, %v159_v36 }
  0xf6   :  { %984 = vpow2.f32 %v539_v37 }
  0xfb   :  { %v162_v38 = vpop.f32.mrf.mxu0  ;;  %v171_v39 = vpop.f32.mrf.mxu1 }
  0xfc   :  { %v985_v40 = vpop.eup %984  ;;  %v899_v41 = vmul.f32 -1.442695, %v162_v38  ;;  %v541_v42 = vmul.f32 1.442695, %v162_v38  ;;  %v902_v43 = vmul.f32 -1.442695, %v171_v39 }
  0xfd   :  { %v1180_v44 = vmul.f32 %v985_v40, %v159_v36  ;;  %v547_v45 = vmul.f32 1.442695, %v171_v39  ;;  %v564_v46 = vsel %vm563_vm8, %v985_v40, 0.0 }
  0xfe   :  { %986 = vpow2.f32 %v899_v41  ;;  %565 = vadd.xlane.f32.xlu2 %v564_v46 }
  0xff   :  { %988 = vpow2.f32 %v541_v42 }
 0x100   :  { %990 = vpow2.f32 %v902_v43 }
 0x101   :  { %992 = vpow2.f32 %v547_v45 }
 0x103   :  { %v1183_v47 = vpop.f32.mrf.mxu0  ;;  %v174_v48 = vpop.f32.mrf.mxu1 }
 0x104   :  { %v987_v49 = vpop.eup %986  ;;  %v900_v50 = vmul.f32 -1.442695, %v1183_v47  ;;  %v543_v51 = vmul.f32 1.442695, %v1183_v47  ;;  %v903_v54 = vmul.f32 -1.442695, %v174_v48 }
 0x105   :  { %v989_v52 = vpop.eup %988  ;;  %v549_v58 = vmul.f32 1.442695, %v174_v48  ;;  %v1190_v59 = vadd.f32 1.0, %v987_v49 }
 0x106   :  { %v991_v53 = vpop.eup %990  ;;  %994 = vpow2.f32 %v900_v50  ;;  %v567_v55 = vsel %vm563_vm8, %v989_v52, 0.0  ;;  %v1188_v56 = vmul.f32 %v989_v52, %v162_v38 }
 0x107   :  { %v993_v57 = vpop.eup %992  ;;  %568 = vadd.xlane.f32.xlu0 %v567_v55  ;;  %996 = vpow2.f32 %v543_v51  ;;  %v1195_v62 = vadd.f32 1.0, %v991_v53  ;;  %v310_v27 = vand.u32 2147483648, %v1190_v59  ;;  %vm304_vm9 = vweird.f32 %v1190_v59 }
 0x108   :  { %v576_v60 = vsel %vm563_vm8, %v993_v57, 0.0  ;;  %v1193_v61 = vmul.f32 %v993_v57, %v171_v39  ;;  %998 = vpow2.f32 %v903_v54  ;;  %v308_v42 = vand.u32 2147483647, %v1190_v59 }
 0x109   :  { %577 = vadd.xlane.f32.xlu2 %v576_v60  ;;  %1000 = vpow2.f32 %v549_v58  ;;  %v355_v36 = vand.u32 2147483648, %v1195_v62  ;;  %v353_v49 = vand.u32 2147483647, %v1195_v62  ;;  %vm349_vm11 = vweird.f32 %v1195_v62 }
 0x10a   :  { %1002 = vrcp.f32 %v1190_v59  ;;  %vm1307_vm5 = vcmp.eq.f32.partialorder %v308_v42, 8.507059e+37 }
 0x10b   :  { %v168_v63 = vpop.f32.mrf.mxu0  ;;  %v1197_v0 = vpop.f32.mrf.mxu1  ;;  %1004 = vrcp.f32 %v1195_v62  ;;  %v1254_v50 = vor.u32 1.1754944e-38, %v355_v36  ;;  %vm1291_vm3 = vcmp.eq.f32.partialorder %v353_v49, 8.507059e+37 }
 0x10c   :  { %v995_v3 = vpop.eup %994  ;;  %v901_v4 = vmul.f32 -1.442695, %v168_v63  ;;  %v545_v5 = vmul.f32 1.442695, %v168_v63  ;;  %v904_v7 = vmul.f32 -1.442695, %v1197_v0 }
 0x10d   :  { %v1204_v6 = vadd.f32 1.0, %v995_v3  ;;  %v997_v8 = vpop.eup %996  ;;  %v551_v9 = vmul.f32 1.442695, %v1197_v0 }
 0x10e   :  { %1006 = vpow2.f32 %v901_v4  ;;  %v570_v10 = vsel %vm563_vm8, %v997_v8, 0.0  ;;  %v999_v11 = vpop.eup %998  ;;  %v1264_v54 = vmul.f32 %v997_v8, %v1183_v47 }
 0x10f   :  { %1008 = vrcp.f32 %v1204_v6  ;;  %571 = vadd.xlane.f32.xlu1 %v570_v10  ;;  %v1001_v12 = vpop.eup %1000  ;;  %v1210_v13 = vadd.f32 1.0, %v999_v11  ;;  %v325_v43 = vand.u32 2147483648, %v1204_v6  ;;  %vm319_vm12 = vweird.f32 %v1204_v6 }
 0x110   :  { %1010 = vpow2.f32 %v545_v5  ;;  %v1212_v14 = vpop.eup %1002  ;;  %v579_v15 = vsel %vm563_vm8, %v1001_v12, 0.0  ;;  %v1228_v24 = vmul.f32 %v1001_v12, %v174_v48  ;;  %v1251_v48 = vor.u32 1.1754944e-38, %v310_v27 }
 0x111   :  { %1012 = vpow2.f32 %v904_v7  ;;  %v1215_v16 = vpop.eup %1004  ;;  %580 = vadd.xlane.f32.xlu0 %v579_v15  ;;  %v300_v22 = vmul.f32 %v1212_v14, %v1190_v59  ;;  %vm305_vm10 = vweird.f32 %v1212_v14  ;;  %v323_v60 = vand.u32 2147483647, %v1204_v6 }
 0x112   :  { %1014 = vpow2.f32 %v551_v9  ;;  %v345_v30 = vmul.f32 %v1215_v16, %v1195_v62  ;;  %vm350_vm13 = vweird.f32 %v1215_v16  ;;  %v326_v3 = vor.u32 1.1754944e-38, %v325_v43  ;;  %vm1303_vm4 = vmor %vm304_vm9, %vm305_vm10 }
 0x113   :  { %1016 = vrcp.f32 %v1210_v13  ;;  %v1218_v17 = vpop.f32.mrf.mxu1  ;;  %v301_v38 = vsub.f32 1.0, %v300_v22  ;;  %vm364_vm14 = vweird.f32 %v1210_v13  ;;  %v368_v8 = vand.u32 2147483647, %v1210_v13  ;;  %vm1337_vm9 = vmor %vm349_vm11, %vm350_vm13 }
 0x114   :  { %v1007_v18 = vpop.eup %1006  ;;  %v905_v19 = vmul.f32 -1.442695, %v1218_v17  ;;  %v553_v20 = vmul.f32 1.442695, %v1218_v17  ;;  %v346_v41 = vsub.f32 1.0, %v345_v30  ;;  %v370_v11 = vand.u32 2147483648, %v1210_v13 }
 0x115   :  { %v1222_v21 = vpop.eup %1008  ;;  %v1226_v23 = vadd.f32 1.0, %v1007_v18  ;;  %v302_v53 = vmul.f32 %v1212_v14, %v301_v38  ;;  %vm1284_vm0 = vcmp.eq.f32.partialorder %v323_v60, 8.507059e+37 }
 0x116   :  { %v1011_v25 = vpop.eup %1010  ;;  %1018 = vpow2.f32 %v905_v19  ;;  %v315_v34 = vmul.f32 %v1222_v21, %v1204_v6  ;;  %v347_v47 = vmul.f32 %v1215_v16, %v346_v41  ;;  %vm320_vm15 = vweird.f32 %v1222_v21 }
 0x117   :  { %v1013_v29 = vpop.eup %1012  ;;  %1020 = vrcp.f32 %v1226_v23  ;;  %v1234_v31 = vmul.f32 %v1011_v25, %v168_v63  ;;  %v573_v32 = vsel %vm563_vm8, %v1011_v25, 0.0  ;;  %v303_v10 = vadd.f32 %v1212_v14, %v302_v53 }
 0x118   :  { %v1015_v33 = vpop.eup %1014  ;;  %v1239_v35 = vadd.f32 1.0, %v1013_v29  ;;  %1022 = vpow2.f32 %v553_v20  ;;  %574 = vadd.xlane.f32.xlu2 %v573_v32  ;;  %v316_v46 = vsub.f32 1.0, %v315_v34  ;;  %vm334_vm1 = vweird.f32 %v1226_v23 }
 0x119   :  { %v1242_v37 = vpop.eup %1016  ;;  %v582_v39 = vsel %vm563_vm8, %v1015_v33, 0.0  ;;  %v338_v22 = vand.u32 2147483647, %v1226_v23  ;;  %v340_v25 = vand.u32 2147483648, %v1226_v23  ;;  %v348_v27 = vadd.f32 %v1215_v16, %v347_v47 }
 0x11a   :  { %v360_v40 = vmul.f32 %v1242_v37, %v1210_v13  ;;  %1024 = vrcp.f32 %v1239_v35  ;;  %583 = vadd.xlane.f32.xlu1 %v582_v39  ;;  %v317_v7 = vmul.f32 %v1222_v21, %v316_v46  ;;  %v383_v36 = vand.u32 2147483647, %v1239_v35 }
 0x11b   :  { %v1315_v38 = vmul.f32 %v1015_v33, %v1197_v0  ;;  %v307_v59 = vsel %vm1303_vm4, %v1212_v14, %v303_v10  ;;  %v385_v42 = vand.u32 2147483648, %v1239_v35  ;;  %vm365_vm10 = vweird.f32 %v1242_v37 }
 0x11c   :  { %v1019_v45 = vpop.eup %1018  ;;  %v361_v57 = vsub.f32 1.0, %v360_v40  ;;  %v318_v32 = vadd.f32 %v1222_v21, %v317_v7  ;;  %vm379_vm11 = vweird.f32 %v1239_v35  ;;  %v371_v47 = vor.u32 1.1754944e-38, %v370_v11 }
 0x11d   :  { %v1256_v51 = vpop.eup %1020  ;;  %v1258_v52 = vadd.f32 1.0, %v1019_v45  ;;  %v341_v45 = vor.u32 1.1754944e-38, %v340_v25 }
 0x11e   :  { %v1266_v55 = vpop.eup %1022  ;;  %v330_v58 = vmul.f32 %v1256_v51, %v1226_v23  ;;  %vm335_vm2 = vweird.f32 %v1256_v51  ;;  %v362_v19 = vmul.f32 %v1242_v37, %v361_v57  ;;  %v386_v57 = vor.u32 1.1754944e-38, %v385_v42 }
 0x11f   :  { %1026 = vrcp.f32 %v1258_v52  ;;  %v585_v63 = vsel %vm563_vm8, %v1266_v55, 0.0  ;;  %vm1324_vm6 = vmor %vm334_vm1, %vm335_vm2  ;;  %vm339_vm2 = vcmp.eq.f32.partialorder %v338_v22, 8.507059e+37 }
 0x120   :  { %v1025_v4 = vpop.eup %1024  ;;  %v331_v5 = vsub.f32 1.0, %v330_v58  ;;  %586 = vadd.xlane.f32.xlu2 %v585_v63  ;;  %v363_v23 = vadd.f32 %v1242_v37, %v362_v19  ;;  %vm1347_vm1 = vmor %vm319_vm12, %vm320_vm15  ;;  %vm384_vm12 = vcmp.eq.f32.partialorder %v383_v36, 8.507059e+37  ;;  %v400_v58 = vand.u32 2147483648, %v1258_v52 }
 0x121   :  { %v375_v9 = vmul.f32 %v1025_v4, %v1239_v35  ;;  %vm380_vm7 = vweird.f32 %v1025_v4  ;;  %v322_v49 = vsel %vm1347_vm1, %v1222_v21, %v318_v32  ;;  %vm1361_vm15 = vmor %vm364_vm14, %vm365_vm10  ;;  %vm369_vm14 = vcmp.eq.f32.partialorder %v368_v8, 8.507059e+37 }
 0x122   :  { %v332_v15 = vmul.f32 %v1256_v51, %v331_v5  ;;  %vm381_vm13 = vmor %vm379_vm11, %vm380_vm7  ;;  %v367_v21 = vsel %vm1361_vm15, %v1242_v37, %v363_v23  ;;  %v327_v63 = vsel %vm1284_vm0, %v326_v3, %v322_v49  ;;  %v312_v37 = vsel %vm1307_vm5, %v1251_v48, %v307_v59 }
 0x123   :  { %v376_v20 = vsub.f32 1.0, %v375_v9  ;;  %v372_v9 = vsel %vm369_vm14, %v371_v47, %v367_v21  ;;  %v401_v10 = vor.u32 1.1754944e-38, %v400_v58  ;;  %v588_v3 = vmul.f32 %v327_v63, %v312_v37 }
 0x124   :  { %v333_v34 = vadd.f32 %v1256_v51, %v332_v15 }
 0x125   :  { %v1027_v39 = vpop.eup %1026  ;;  %v377_v41 = vmul.f32 %v1025_v4, %v376_v20 }
 0x126   :  { %v390_v0 = vmul.f32 %v1027_v39, %v1258_v52  ;;  %v337_v33 = vsel %vm1324_vm6, %v1256_v51, %v333_v34  ;;  %v352_v51 = vsel %vm1337_vm9, %v1215_v16, %v348_v27  ;;  %vm395_vm4 = vweird.f32 %v1027_v39 }
 0x127   :  { %v378_v46 = vadd.f32 %v1025_v4, %v377_v41  ;;  %v342_v6 = vsel %vm339_vm2, %v341_v45, %v337_v33  ;;  %v398_v16 = vand.u32 2147483647, %v1258_v52  ;;  %v357_v13 = vsel %vm1291_vm3, %v1254_v50, %v352_v51 }
 0x128   :  { %v391_v62 = vsub.f32 1.0, %v390_v0  ;;  %vm394_vm6 = vweird.f32 %v1258_v52  ;;  %v590_v7 = vmul.f32 %v357_v13, %v342_v6  ;;  %v589_v19 = vmul.f32 %v342_v6, %v327_v63 }
 0x129   :  { %v382_v35 = vsel %vm381_vm13, %v1025_v4, %v378_v46  ;;  %vm396_vm7 = vmor %vm394_vm6, %vm395_vm4  ;;  %vm399_vm0 = vcmp.eq.f32.partialorder %v398_v16, 8.507059e+37  ;;  %v591_v20 = vmul.f32 %v372_v9, %v357_v13 }
 0x12a   :  { %v392_v60 = vmul.f32 %v1027_v39, %v391_v62  ;;  %v387_v4 = vsel %vm384_vm12, %v386_v57, %v382_v35  ;;  %v602_v50 = vmul.f32 %v590_v7, %v588_v3 }
 0x12b   :  { %v592_v15 = vmul.f32 %v387_v4, %v372_v9  ;;  %v603_v52 = vmul.f32 %v591_v20, %v589_v19 }
 0x12c   :  { %v393_v5 = vadd.f32 %v1027_v39, %v392_v60 }
 0x12d   :  { %v604_v27 = vmul.f32 %v592_v15, %v590_v7 }
 0x12e   :  { %v397_v12 = vsel %vm396_vm7, %v1027_v39, %v393_v5 }
 0x12f   :  { %v402_v18 = vsel %vm399_vm0, %v401_v10, %v397_v12 }
 0x130   :  { %v606_v11 = vmul.f32 %v592_v15, %v402_v18  ;;  %v593_v22 = vmul.f32 %v402_v18, %v387_v4  ;;  %v616_v48 = vmul.f32 %v604_v27, %v402_v18 }
 0x132   :  { %v614_v8 = vmul.f32 %v606_v11, %v602_v50  ;;  %v615_v25 = vmul.f32 %v603_v52, %v593_v22  ;;  %v605_v29 = vmul.f32 %v593_v22, %v591_v20 }
 0x134   :  { %639 = vperm.xlu1 %975, %v614_v8  }
 0x138   :  { %644 = vperm.xlu2 %976, %v615_v25  }
 0x13c   :  { %649 = vperm.xlu1 %975, %v616_v48  }
 0x140   :  { %654 = vperm.xlu2 %976, %v605_v29  }
 0x144   :  { %659 = vperm.xlu1 %975, %v606_v11  }
 0x148   :  { %664 = vperm.xlu2 %976, %v593_v22  }
 0x14c   :  { %674 = vperm.xlu1 %975, %v1067_v28  }
 0x150   :  { %977 = vset.pattern.permute.xlu2 %v1066_v2 }
 0x154   :  { %979 = vset.pattern.permute.xlu1 %v1066_v2 }
 0x171   :  { %v566_v30 = vpop.xlane.xlu2 %565 }
 0x172   :  { %v622_v14 = vmul.f32 %v614_v8, %v566_v30 }
 0x17a   :  { %v569_v34 = vpop.xlane.xlu0 %568 }
 0x17b   :  { %v623_v42 = vmul.f32 %v615_v25, %v569_v34 }
 0x17c   :  { %v578_v32 = vpop.xlane.xlu2 %577 }
 0x17d   :  { %v626_v23 = vmul.f32 %v606_v11, %v578_v32  ;;  %v630_v62 = vadd.f32 %v623_v42, %v622_v14  ;;  %v745_v32 = vld [vmem:[%s1483_s1 + $0x98] sm:$0xff] }
 0x17e   :  { %763 = vmatpush.msrb.mxu1 %v745_v32 }
 0x182   :  { %v572_v36 = vpop.xlane.xlu1 %571 }
 0x183   :  { %v624_v0 = vmul.f32 %v616_v48, %v572_v36 }
 0x184   :  { %v581_v59 = vpop.xlane.xlu0 %580 }
 0x185   :  { %v627_v33 = vmul.f32 %v593_v22, %v581_v59 }
 0x187   :  { %v632_v49 = vadd.f32 %v627_v33, %v626_v23 }
 0x18b   :  { %v575_v39 = vpop.xlane.xlu2 %574 }
 0x18c   :  { %v625_v40 = vmul.f32 %v605_v29, %v575_v39 }
 0x18d   :  { %v584_v41 = vpop.xlane.xlu1 %583 }
 0x18e   :  { %v628_v43 = vmul.f32 %v584_v41, %v402_v18  ;;  %v631_v45 = vadd.f32 %v625_v40, %v624_v0 }
 0x190   :  { %v634_v6 = vadd.f32 %v631_v45, %v630_v62  ;;  %v743_v45 = vld [vmem:[%s1483_s1 + $0x88] sm:$0xff] }
 0x193   :  { %v587_v46 = vpop.xlane.xlu2 %586 }
 0x194   :  { %v633_v51 = vadd.f32 %v628_v43, %v587_v46  ;;  %v744_v43 = vld [vmem:[%s1483_s1 + $0x90] sm:$0xff]  ;;  %v742_v46 = vld [vmem:[%s1483_s1 + $0x80] sm:$0xff] }
 0x195   :  { %764 = vmatpush.msrb.mxu1 %v744_v43 }
 0x196   :  { %v635_v53 = vadd.f32 %v633_v51, %v632_v49 }
 0x197   :  { %765 = vmatpush.msrb.mxu1 %v743_v45 }
 0x198   :  { %v636_v35 = vadd.f32 %v635_v53, %v634_v6 }
 0x199   :  { %766 = vmatpush.msrb.mxu1 %v742_v46 }
 0x19a   :  { %v692_v57 = vadd.f32 1e-08, %v636_v35 }
 0x19b   :  { %v645_v58 = vpop.permute.xlu2 %644 }
 0x19c   :  { %695 = vperm.xlu0 %974, %v692_v57   ;;  %v678_v21 = vmul.f32 %v645_v58, %v1188_v56 }
 0x1a3   :  { %v655_v13 = vpop.permute.xlu2 %654 }
 0x1a4   :  { %669 = vperm.xlu0 %974, %v402_v18   ;;  %v680_v4 = vmul.f32 %v655_v13, %v1234_v31 }
 0x1a6   :  { %v640_v60 = vpop.permute.xlu1 %639 }
 0x1a7   :  { %v677_v16 = vmul.f32 %v640_v60, %v1180_v44 }
 0x1a9   :  { %v685_v63 = vadd.f32 %v678_v21, %v677_v16 }
 0x1ab   :  { %v665_v9 = vpop.permute.xlu2 %664 }
 0x1ac   :  { %978 = vset.pattern.permute.xlu0 %v1066_v2  ;;  %v682_v12 = vmul.f32 %v665_v9, %v1228_v24  ;;  %v562_v2 = vmul.f32 %v1266_v55, %v1218_v17 }
 0x1ae   :  { %v650_v47 = vpop.permute.xlu1 %649 }
 0x1af   :  { %v679_v5 = vmul.f32 %v650_v47, %v1264_v54 }
 0x1b1   :  { %v686_v7 = vadd.f32 %v680_v4, %v679_v5 }
 0x1b3   :  { %v689_v37 = vadd.f32 %v686_v7, %v685_v63  ;;  %v981_v63 = vld [vmem:[%s1483_s1 + $0xc0] ss:$0 sm:$0xff] }
 0x1b6   :  { %v660_v10 = vpop.permute.xlu1 %659 }
 0x1b7   :  { %v681_v3 = vmul.f32 %v660_v10, %v1193_v61 }
 0x1b9   :  { %v687_v56 = vadd.f32 %v682_v12, %v681_v3 }
 0x1be   :  { %v675_v44 = vpop.permute.xlu1 %674 }
 0x1bf   :  { %v684_v11 = vmul.f32 %v675_v44, %v562_v2 }
 0x20e   :  { %v696_v15 = vpop.permute.xlu0 %695 }
 0x20f   :  { %1028 = vrcp.f32 %v696_v15  ;;  %v709_v20 = vand.u32 2147483648, %v696_v15  ;;  %v707_v24 = vand.u32 2147483647, %v696_v15  ;;  %vm703_vm5 = vweird.f32 %v696_v15 }
 0x211   :  { %v710_v27 = vor.u32 1.1754944e-38, %v709_v20  ;;  %vm708_vm10 = vcmp.eq.f32.partialorder %v707_v24, 8.507059e+37  ;;  %v22_v20 = vld [vmem:[%s1482_s0 + $0x50] sm:$0xff]  ;;  %v25_v24 = vld [vmem:[%s1482_s0 + $0x68] sm:$0xff] }
 0x215   :  { %v1029_v18 = vpop.eup %1028 }
 0x216   :  { %v699_v50 = vmul.f32 %v1029_v18, %v696_v15  ;;  %v670_v31 = vpop.permute.xlu0 %669  ;;  %vm704_vm3 = vweird.f32 %v1029_v18 }
 0x217   :  { %v683_v54 = vmul.f32 %v670_v31, %v1315_v38  ;;  %vm705_vm9 = vmor %vm703_vm5, %vm704_vm3  ;;  %v1069_v38 = vmov 32.0  }
 0x218   :  { %v700_v19 = vsub.f32 1.0, %v699_v50  ;;  %1030 = vrcp.f32 %v1069_v38 }
 0x219   :  { %v688_v8 = vadd.f32 %v684_v11, %v683_v54  ;;  %v24_v54 = vld [vmem:[%s1482_s0 + $0x60] sm:$0xff] }
 0x21a   :  { %v701_v22 = vmul.f32 %v1029_v18, %v700_v19  ;;  %v20_v19 = vld [vmem:[%s1482_s0 + $0x40] sm:$0xff] }
 0x21b   :  { %v690_v61 = vadd.f32 %v688_v8, %v687_v56  ;;  %v23_v8 = vld [vmem:[%s1482_s0 + $0x58] sm:$0xff] }
 0x21c   :  { %v702_v52 = vadd.f32 %v1029_v18, %v701_v22  ;;  %v27_v22 = vld [vmem:[%s1482_s0 + $0x78] sm:$0xff] }
 0x21d   :  { %v691_v25 = vadd.f32 %v690_v61, %v689_v37 }
 0x21e   :  { %v706_v48 = vsel %vm705_vm9, %v1029_v18, %v702_v52  ;;  %v1031_v34 = vpop.eup %1030 }
 0x21f   :  { %v711_v55 = vsel %vm708_vm10, %v710_v27, %v706_v48  ;;  %v717_v36 = vmul.f32 32.0, %v1031_v34  ;;  %vm721_vm1 = vweird.f32 %v1031_v34 }
 0x220   :  { %v712_v29 = vmul.f32 %v711_v55, %v691_v25  ;;  %v26_v25 = vld [vmem:[%s1482_s0 + $0x70] sm:$0xff] }
 0x221   :  { %v718_v39 = vsub.f32 1.0, %v717_v36 }
 0x222   :  { %v713_v30 = vsel %vm563_vm8, %v712_v29, 0.0 }
 0x223   :  { %714 = vadd.xlane.f32.xlu2 %v713_v30  ;;  %v719_v59 = vmul.f32 %v1031_v34, %v718_v39  ;;  %v823_v39 = vld [vmem:[%s1483_s1 + $0xb0] sm:$0xff] }
 0x225   :  { %v720_v40 = vadd.f32 %v1031_v34, %v719_v59 }
 0x227   :  { %v1396_v41 = vsel %vm721_vm1, %v1031_v34, %v720_v40  ;;  %v822_v40 = vld [vmem:[%s1483_s1 + $0xa8] sm:$0xff] }
 0x23b   :  { %55 = vperm.xlu2 %977, %v20_v19  }
 0x243   :  { %61 = vperm.xlu2 %977, %v22_v20  }
 0x24b   :  { %70 = vperm.xlu2 %977, %v25_v24  }
 0x253   :  { %73 = vperm.xlu2 %977, %v26_v25  }
 0x296   :  { %v715_v42 = vpop.xlane.xlu2 %714 }
 0x297   :  { %v723_v0 = vmul.f32 %v1396_v41, %v715_v42 }
 0x299   :  { %v724_v33 = vsub.f32 %v712_v29, %v723_v0  ;;  %v21_v29 = vld [vmem:[%s1482_s0 + $0x48] sm:$0xff] }
 0x29b   :  { %v725_v14 = vmul.f32 %v724_v33, %v724_v33 }
 0x29d   :  { %v726_v23 = vsel %vm563_vm8, %v725_v14, 0.0 }
 0x29e   :  { %727 = vadd.xlane.f32.xlu0 %v726_v23  ;;  %v56_v30 = vpop.permute.xlu2 %55  ;;  %v821_v23 = vld [vmem:[%s1483_s1 + $0xa0] sm:$0xff] }
 0x29f   :  { %vm86_vm6 = vcmp.eq.s32.totalorder %v56_v30, %v1162_v26 }
 0x2a0   :  { %891 = vmatmul.msk.f32.vlgmr.msra.gmra.mxu2 %vm86_vm6, %v1067_v28 }
 0x2a6   :  { %v62_v32 = vpop.permute.xlu2 %61 }
 0x2a7   :  { %vm88_vm10 = vcmp.eq.s32.totalorder %v62_v32, %v1162_v26 }
 0x2ae   :  { %v71_v34 = vpop.permute.xlu2 %70 }
 0x2af   :  { %vm91_vm0 = vcmp.eq.s32.totalorder %v71_v34, %v1162_v26 }
 0x2b6   :  { %v74_v59 = vpop.permute.xlu2 %73 }
 0x2b7   :  { %vm92_vm3 = vcmp.eq.s32.totalorder %v74_v59, %v1162_v26 }
 0x311   :  { %v728_v62 = vpop.xlane.xlu0 %727 }
 0x312   :  { %v729_v49 = vmul.f32 %v728_v62, %v1396_v41 }
 0x314   :  { %v730_v51 = vadd.f32 1e-05, %v729_v49 }
 0x316   :  { %1032 = vrsqrt.f32 %v730_v51  ;;  %vm737_vm11 = vweird.f32 %v730_v51 }
 0x31c   :  { %v1033_v6 = vpop.eup %1032 }
 0x31d   :  { %v732_v53 = vmul.f32 %v1033_v6, %v730_v51  ;;  %vm738_vm2 = vweird.f32 %v1033_v6 }
 0x31e   :  { %vm739_vm13 = vmor %vm737_vm11, %vm738_vm2 }
 0x31f   :  { %v733_v35 = vmul.f32 %v1033_v6, %v732_v53 }
 0x321   :  { %v734_v57 = vmul.f32 0.5, %v733_v35  ;;  %v982_v35 = vld [vmem:[%s1483_s1 + $0xc8] ss:$0 sm:$0xff] }
 0x323   :  { %v735_v58 = vsub.f32 1.5, %v734_v57 }
 0x325   :  { %v736_v60 = vmul.f32 %v1033_v6, %v735_v58 }
 0x327   :  { %v740_v21 = vsel %vm739_vm13, %v1033_v6, %v736_v60  ;;  %v183_v60 = vpop.f32.mrf.mxu2 }
 0x328   :  { %v741_v16 = vmul.f32 %v740_v21, %v724_v33 }
 0x32a   :  { %914 = vmatmul.msk.f32.vlgmr.msrb.gmra.mxu1 %vm563_vm8, %v741_v16 }
 0x3a7   :  { %v768_v13 = vpop.f32.mrf.mxu1 }
 0x3a8   :  { %v769_v47 = vadd.f32 %v981_v63, %v768_v13 }
 0x3aa   :  { %791 = vrot.lane.b32.xlu1 %v769_v47, %s1070_s11  ;;  %v915_v4 = vmul.f32 -1.442695, %v769_v47  ;;  %s1071_s11 = smov [#allocation2]  }
 0x3ab   :  { %s856_s12 = sshll.u32 %s1071_s11, 4  ;;  %s857_s12 = int_to_ptr.vmem [resolvable:$true] %s856_s12 }
 0x3ac   :  { %1034 = vpow2.f32 %v915_v4 }
 0x3b2   :  { %v1035_v5 = vpop.eup %1034 }
 0x3b3   :  { %v774_v7 = vadd.f32 1.0, %v1035_v5 }
 0x3b5   :  { %1036 = vrcp.f32 %v774_v7  ;;  %v786_v56 = vand.u32 2147483648, %v774_v7  ;;  %vm780_vm15 = vweird.f32 %v774_v7  ;;  %v784_v15 = vand.u32 2147483647, %v774_v7 }
 0x3b7   :  { %v787_v18 = vor.u32 1.1754944e-38, %v786_v56  ;;  %vm785_vm14 = vcmp.eq.f32.partialorder %v784_v15, 8.507059e+37 }
 0x3bb   :  { %v1037_v37 = vpop.eup %1036 }
 0x3bc   :  { %v776_v9 = vmul.f32 %v1037_v37, %v774_v7  ;;  %vm781_vm12 = vweird.f32 %v1037_v37  ;;  %v983_v7 = vld [vmem:[%s1483_s1 + $0xd0] ss:$0 sm:$0xff] }
 0x3bd   :  { %vm782_vm4 = vmor %vm780_vm15, %vm781_vm12 }
 0x3be   :  { %v777_v10 = vsub.f32 1.0, %v776_v9 }
 0x3c0   :  { %v778_v12 = vmul.f32 %v1037_v37, %v777_v10 }
 0x3c2   :  { %v779_v3 = vadd.f32 %v1037_v37, %v778_v12 }
 0x3c4   :  { %v783_v44 = vsel %vm782_vm4, %v1037_v37, %v779_v3 }
 0x3c5   :  { %v788_v50 = vsel %vm785_vm14, %v787_v18, %v783_v44 }
 0x41c   :  { %v792_v2 = vpop.permute.xlu1 %791 }
 0x41d   :  { %v794_v31 = vmul.f32 %v792_v2, %v788_v50 }
 0x41f   :  { %v795_v11 = vsel %vm563_vm8, %v794_v31, 0.0 }
 0x420   :  { %796 = vadd.xlane.f32.xlu1 %v795_v11 }
 0x439   :  { %67 = vperm.xlu1 %979, %v24_v54  }
 0x441   :  { %64 = vperm.xlu1 %979, %v23_v8  }
 0x449   :  { %76 = vperm.xlu1 %979, %v27_v22  }
 0x493   :  { %v797_v61 = vpop.xlane.xlu1 %796 }
 0x494   :  { %v798_v52 = vmul.f32 %v797_v61, %v1396_v41 }
 0x496   :  { %v799_v27 = vsub.f32 %v794_v31, %v798_v52 }
 0x498   :  { %v800_v48 = vmul.f32 %v799_v27, %v799_v27 }
 0x49a   :  { %v801_v55 = vsel %vm563_vm8, %v800_v48, 0.0 }
 0x49b   :  { %802 = vadd.xlane.f32.xlu0 %v801_v55 }
 0x4ab   :  { %v68_v38 = vpop.permute.xlu1 %67 }
 0x4ac   :  { %vm90_vm7 = vcmp.eq.s32.totalorder %v68_v38, %v1162_v26 }
 0x4ad   :  { %895 = vmatmul.msk.f32.vlgmr.msra.gmra.mxu3 %vm90_vm7, %v1067_v28 }
 0x4af   :  { %58 = vperm.xlu0 %978, %v21_v29  }
 0x4b3   :  { %v65_v36 = vpop.permute.xlu1 %64 }
 0x4b4   :  { %vm89_vm13 = vcmp.eq.s32.totalorder %v65_v36, %v1162_v26 }
 0x4b5   :  { %896 = vmatmul.msk.f32.gmra.mxu3 %vm91_vm0, %v1067_v28 }
 0x4b7   :  { %980 = vset.pattern.permute.xlu0 %v1068_v1  ;;  %v824_v1 = vld [vmem:[%s1483_s1 + $0xb8] sm:$0xff] }
 0x4b8   :  { %842 = vmatpush.msrb.mxu2 %v824_v1 }
 0x4ba   :  { %843 = vmatpush.msrb.mxu2 %v823_v39 }
 0x4bb   :  { %v77_v42 = vpop.permute.xlu1 %76 }
 0x4bc   :  { %844 = vmatpush.msrb.mxu2 %v822_v40  ;;  %vm93_vm5 = vcmp.eq.s32.totalorder %v77_v42, %v1162_v26 }
 0x4bd   :  { %897 = vmatmul.msk.f32.gmra.mxu3 %vm92_vm3, %v1067_v28 }
 0x4be   :  { %845 = vmatpush.msrb.mxu2 %v821_v23 }
 0x4c5   :  { %898 = vmatmul.msk.f32.gmra.mxu3 %vm93_vm5, %v1067_v28 }
 0x50e   :  { %v803_v0 = vpop.xlane.xlu0 %802 }
 0x50f   :  { %v804_v33 = vmul.f32 %v803_v0, %v1396_v41 }
 0x511   :  { %v805_v14 = vadd.f32 1e-05, %v804_v33 }
 0x513   :  { %1038 = vrsqrt.f32 %v805_v14  ;;  %vm812_vm2 = vweird.f32 %v805_v14 }
 0x519   :  { %v1039_v43 = vpop.eup %1038 }
 0x51a   :  { %v807_v45 = vmul.f32 %v1039_v43, %v805_v14  ;;  %vm813_vm1 = vweird.f32 %v1039_v43 }
 0x51b   :  { %vm814_vm11 = vmor %vm812_vm2, %vm813_vm1 }
 0x51c   :  { %v808_v46 = vmul.f32 %v1039_v43, %v807_v45 }
 0x51e   :  { %v809_v49 = vmul.f32 0.5, %v808_v46 }
 0x520   :  { %v810_v51 = vsub.f32 1.5, %v809_v49 }
 0x521   :  { %v59_v62 = vpop.permute.xlu0 %58 }
 0x522   :  { %vm87_vm9 = vcmp.eq.s32.totalorder %v59_v62, %v1162_v26  ;;  %v811_v41 = vmul.f32 %v1039_v43, %v810_v51 }
 0x523   :  { %892 = vmatmul.msk.f32.gmra.mxu2 %vm87_vm9, %v1067_v28 }
 0x524   :  { %v815_v6 = vsel %vm814_vm11, %v1039_v43, %v811_v41 }
 0x525   :  { %v816_v53 = vmul.f32 %v815_v6, %v799_v27 }
 0x527   :  { %v819_v57 = vmul.f32 %v982_v35, %v816_v53 }
 0x529   :  { %v820_v58 = vadd.f32 %v819_v57, %v1218_v17 }
 0x52b   :  { %893 = vmatmul.msk.f32.gmra.mxu2 %vm88_vm10, %v1067_v28 }
 0x530   :  { %v195_v21 = vpop.f32.mrf.mxu3 }
 0x533   :  { %894 = vmatmul.msk.f32.gmra.mxu2 %vm89_vm13, %v1067_v28 }
 0x538   :  { %v198_v16 = vpop.f32.mrf.mxu3 }
 0x53b   :  { %916 = vmatmul.msk.f32.vlgmr.msrb.gmra.mxu2 %vm563_vm8, %v820_v58 }
 0x540   :  { %v201_v63 = vpop.f32.mrf.mxu3 }
 0x548   :  { %v204_v13 = vpop.f32.mrf.mxu3 }
 0x5a6   :  { %v186_v47 = vpop.f32.mrf.mxu2 }
 0x5ae   :  { %v189_v4 = vpop.f32.mrf.mxu2 }
 0x5b6   :  { %v192_v5 = vpop.f32.mrf.mxu2 }
 0x5be   :  { %v847_v26 = vpop.f32.mrf.mxu2 }
 0x5bf   :  { %v848_v28 = vadd.f32 %v983_v7, %v847_v26 }
 0x5c1   :  { %850 = vst [vmem:[#allocation2] sm:$0x3] %v848_v28 }
 0x5c2   :  { %861 = dma.vmem_to_hbm [thread:$0]  %s857_s12, 32, %s859_s15, [#allocation3]  }
 0x5c3   :  { %1064 = dma.done.wait [#allocation3], 32  }
 0x5c4   :  { %1065 = vsyncadd [#allocation3], 4294967264 }
 0x5c5   :  { %866 = vsyncpa [#allocation3], 1 }

</bundles_post_ra>
